<compile_context>
chip_gen: v6e
topology: v6e:2x2x1
jax: 0.10.0
libtpu: 0.0.40
codegen_flags: <defaults>
</compile_context>

<pallas_src>
import functools

import jax
import jax.numpy as jnp
from jax.experimental import pallas as pl
from jax.experimental.pallas import tpu as pltpu


def _round_up(x: int, m: int) -> int:
    return ((x + m - 1) // m) * m


def _vmem_capacity_bytes() -> int:
    try:
        info = pltpu.get_tpu_info()
        cap = getattr(info, "vmem_capacity_bytes", None)
        if cap:
            return int(cap)
    except Exception:
        pass
    return 64 << 20  # conservative fallback (v7x per-TensorCore size)


def _mlp_glu_kernel(x_ref, w1_ref, b1_ref, w2_ref, b2_ref, w3_ref, b3_ref,
                    o_ref, *, compute_dtype, activation):
    x = x_ref[...].astype(compute_dtype)

    # Linear 1 (MXU, f32 accumulation) + bias + activation (f32, EUP).
    h = jnp.dot(x, w1_ref[...], preferred_element_type=jnp.float32)
    h = h + b1_ref[...].astype(jnp.float32)
    if activation == "tanh":
        h = jnp.tanh(h)
    elif activation == "relu":
        h = jnp.maximum(h, 0.0)
    elif activation == "gelu":
        h = jax.nn.gelu(h)
    else:
        raise ValueError("wrong activation function was selected")

    # Linear 2.
    y = jnp.dot(h.astype(compute_dtype), w2_ref[...],
                preferred_element_type=jnp.float32)
    y = (y + b2_ref[...].astype(jnp.float32)).astype(compute_dtype)

    # GLU: one fused (d_out_p, 2*d_out_p) matmul; the f32 result is sliced at
    # the lane-aligned d_out_p boundary (multiple of 128 after padding), so the
    # slice and the final store stay lane-dense.
    z = jnp.dot(y, w3_ref[...], preferred_element_type=jnp.float32)
    z = z + b3_ref[...].astype(jnp.float32)
    d = o_ref.shape[-1]
    o_ref[...] = (z[:, :d] * jax.nn.sigmoid(z[:, d:])).astype(o_ref.dtype)


def mlp_glu_pallas(x, w1, b1, w2, b2, w3, b3, *, row_tile=512, lane_align=128,
                   x_buffers=2, matmul_dtype=None, activation="tanh"):
    """x: (M, input_dim). w1:(d_in,d_h) w2:(d_h,d_out) w3:(d_out,2*d_out);
    biases (1, out). Returns (M, d_out) = GLU(Linear(act(Linear(x))))."""
    M, d_in = x.shape
    d_hidden = w1.shape[1]
    d_out = w2.shape[1]
    assert w1.shape == (d_in, d_hidden)
    assert w2.shape == (d_hidden, d_out)
    assert w3.shape == (d_out, 2 * d_out) and b3.shape[-1] == 2 * d_out

    if matmul_dtype is None:
        matmul_dtype = w1.dtype

    # ---- Feature padding: lane-dense (multiple of 128; 256 also matches the
    # 2x256^2 MXU on v6e/v7x).  Zero padding is exact for this network:
    # padded hidden/out columns stay exactly 0 through tanh/relu/gelu and all
    # matmuls, and are sliced off at the end.
    d_in_p = _round_up(d_in, lane_align)
    d_h_p = _round_up(d_hidden, lane_align)
    d_o_p = _round_up(d_out, lane_align)

    def pad2(a, r, c):
        return jnp.pad(a, ((0, r - a.shape[0]), (0, c - a.shape[1])))

    x_p = pad2(x, M, d_in_p)
    w1_p = pad2(w1, d_in_p, d_h_p)
    b1_p = pad2(b1, 1, d_h_p)
    w2_p = pad2(w2, d_h_p, d_o_p)
    b2_p = pad2(b2, 1, d_o_p)
    # Split the GLU weight into value/gate halves, pad each half, re-concat so
    # the value/gate boundary lands exactly on the lane-aligned d_o_p column.
    w3v, w3g = w3[:, :d_out], w3[:, d_out:]
    b3v, b3g = b3[:, :d_out], b3[:, d_out:]
    w3_p = jnp.concatenate([pad2(w3v, d_o_p, d_o_p), pad2(w3g, d_o_p, d_o_p)], axis=1)
    b3_p = jnp.concatenate([pad2(b3v, 1, d_o_p), pad2(b3g, 1, d_o_p)], axis=1)

    # ---- Row tile: multiple of the sublane packing granularity; default 512
    # so per-step overhead (~0.35us) is amortised; clamped so the ("parallel",)
    # row grid has >= 2 steps (both v7x TensorCores get work).
    sub = 16 if x.dtype == jnp.bfloat16 else 8
    tm = max(sub, _round_up(min(row_tile, _round_up(M, sub)), sub))
    if _round_up(M, tm) // tm < 2 and M > sub:
        tm = max(sub, _round_up((M + 1) // 2, sub))

    # ---- Generation-aware VMEM budget (weights resident, single-buffered).
    itm = jnp.dtype(x.dtype).itemsize
    weight_bytes = sum(int(a.size) * jnp.dtype(a.dtype).itemsize
                       for a in (w1_p, b1_p, w2_p, b2_p, w3_p, b3_p))

    def footprint(tm_, weight_buffers):
        stream = (max(2, x_buffers) * tm_ * d_in_p * itm     # pipelined x tiles
                  + 2 * tm_ * d_o_p * itm)                   # double-buffered out
        interm = 4 * tm_ * (d_h_p + 4 * d_o_p)               # f32 h, y, z, out temps
        return weight_buffers * weight_bytes + stream + interm

    headroom = 4 << 20
    cap = int(0.85 * _vmem_capacity_bytes())
    if weight_bytes + headroom > cap:
        # TODO(synk): add a K/N reduction grid axis (marked "arbitrary", placed
        # last) with an f32 VMEM accumulator when weights exceed the per-core
        # VMEM budget instead of the all-weights-resident design.
        raise NotImplementedError("weights exceed the per-core VMEM budget")
    while tm > sub and footprint(tm, 1) + headroom > cap:
        tm = max(sub, _round_up(tm // 2, sub))

    M_pad = _round_up(M, tm)
    if M_pad != M:
        x_p = jnp.pad(x_p, ((0, M_pad - M), (0, 0)))
    grid = (M_pad // tm,)

    # ---- Advisory cost estimate for XLA scheduling around the custom call.
    flops = 2 * M_pad * (d_in_p * d_h_p + d_h_p * d_o_p + 2 * d_o_p * d_o_p)
    transcendentals = M_pad * (d_h_p + d_o_p)
    bytes_accessed = M_pad * (d_in_p + d_o_p) * itm + weight_bytes
    cost = pl.CostEstimate(flops=flops, transcendentals=transcendentals,
                           bytes_accessed=bytes_accessed)

    kernel = functools.partial(_mlp_glu_kernel, compute_dtype=matmul_dtype,
                               activation=activation)

    def build(single_buffer_weights):
        wkw = {"pipeline_mode": pl.Buffered(1)} if single_buffer_weights else {}
        xkw = {"pipeline_mode": pl.Buffered(x_buffers)} if x_buffers != 2 else {}
        in_specs = [
            pl.BlockSpec((tm, d_in_p), lambda i: (i, 0), **xkw),        # x rows
            pl.BlockSpec((d_in_p, d_h_p), lambda i: (0, 0), **wkw),     # W1
            pl.BlockSpec((1, d_h_p), lambda i: (0, 0), **wkw),          # b1
            pl.BlockSpec((d_h_p, d_o_p), lambda i: (0, 0), **wkw),      # W2
            pl.BlockSpec((1, d_o_p), lambda i: (0, 0), **wkw),          # b2
            pl.BlockSpec((d_o_p, 2 * d_o_p), lambda i: (0, 0), **wkw),  # W3 (GLU)
            pl.BlockSpec((1, 2 * d_o_p), lambda i: (0, 0), **wkw),      # b3 (GLU)
        ]
        weight_buffers = 1 if single_buffer_weights else 2
        vmem_limit = int(max(16 << 20,
                             min(cap, footprint(tm, weight_buffers) + headroom)))
        return pl.pallas_call(
            kernel,
            out_shape=jax.ShapeDtypeStruct((M_pad, d_o_p), x.dtype),
            grid_spec=pltpu.PrefetchScalarGridSpec(
                num_scalar_prefetch=0,
                grid=grid,
                in_specs=in_specs,
                out_specs=pl.BlockSpec((tm, d_o_p), lambda i: (i, 0)),
            ),
            compiler_params=pltpu.CompilerParams(
                dimension_semantics=("parallel",),
                vmem_limit_bytes=vmem_limit,
            ),
            cost_estimate=cost,
        )

    args = (x_p, w1_p, b1_p, w2_p, b2_p, w3_p, b3_p)
    try:
        out = build(True)(*args)
    except Exception:
        # pipeline_mode / Buffered(1) unsupported on this jax version: fall back
        # to default double-buffered weights (identical numerics).
        out = build(False)(*args)

    return out[:M, :d_out]


def init_params(key, input_dim, hidden_dim, output_dim, dtype=jnp.float32):
    """PyTorch-Linear-like uniform init, stored as (in, out) / (1, out)."""
    ks = jax.random.split(key, 6)

    def linear(kw, kb, fan_in, fan_out):
        bound = 1.0 / float(fan_in) ** 0.5
        w = jax.random.uniform(kw, (fan_in, fan_out), dtype, -bound, bound)
        b = jax.random.uniform(kb, (1, fan_out), dtype, -bound, bound)
        return w, b

    w1, b1 = linear(ks[0], ks[1], input_dim, hidden_dim)
    w2, b2 = linear(ks[2], ks[3], hidden_dim, output_dim)
    w3, b3 = linear(ks[4], ks[5], output_dim, 2 * output_dim)
    return w1, b1, w2, b2, w3, b3


def mlp_glu_reference(x, w1, b1, w2, b2, w3, b3):
    h = jnp.tanh(x @ w1 + b1)
    y = h @ w2 + b2
    z = y @ w3 + b3
    d = y.shape[-1]
    return z[..., :d] * jax.nn.sigmoid(z[..., d:])


if __name__ == "__main__":
    batch, seq = 2, 8
    input_dim, hidden_dim, output_dim = 32, 64, 32

    key = jax.random.PRNGKey(0)
    kx, kp = jax.random.split(key)

    x = jax.random.normal(kx, (batch, seq, input_dim), dtype=jnp.float32)
    params = init_params(kp, input_dim, hidden_dim, output_dim)

    # Flatten leading dims to rows; feature dim stays last.
    x2d = x.reshape(batch * seq, input_dim)
    ref_f32 = mlp_glu_reference(x2d, *params)

    # ---- f32 path (tight numerical check; row-tile clamp gives a 2-step grid).
    out_f32 = mlp_glu_pallas(x2d, *params)
    jax.block_until_ready(out_f32)
    assert out_f32.shape == (batch * seq, output_dim)
    assert jnp.allclose(out_f32, ref_f32, atol=1e-5, rtol=1e-5), "f32 mismatch"

    # ---- bf16 operand path (MXU fast path; f32 accumulation, loose tolerance).
    x_bf = x2d.astype(jnp.bfloat16)
    w1, b1, w2, b2, w3, b3 = params
    out_bf = mlp_glu_pallas(x_bf, w1.astype(jnp.bfloat16), b1,
                            w2.astype(jnp.bfloat16), b2,
                            w3.astype(jnp.bfloat16), b3)
    jax.block_until_ready(out_bf)
    assert jnp.allclose(out_bf.astype(jnp.float32), ref_f32,
                        atol=5e-2, rtol=5e-2), "bf16 mismatch"

    out = out_f32.reshape(batch, seq, output_dim)
    jax.block_until_ready(out)
    print("KERNEL_OK")
</pallas_src>

<mosaic_0001>
module attributes {stable_mosaic.version = 11 : i64} {
  func.func @_mlp_glu_kernel(%arg0: i32, %arg1: memref<8x128xf32, #tpu.memory_space<vmem>>, %arg2: memref<128x128xf32, #tpu.memory_space<vmem>>, %arg3: memref<1x128xf32, #tpu.memory_space<vmem>>, %arg4: memref<128x128xf32, #tpu.memory_space<vmem>>, %arg5: memref<1x128xf32, #tpu.memory_space<vmem>>, %arg6: memref<128x256xf32, #tpu.memory_space<vmem>>, %arg7: memref<1x256xf32, #tpu.memory_space<vmem>>, %arg8: memref<8x128xf32, #tpu.memory_space<vmem>>) attributes {dimension_semantics = [#tpu.dimension_semantics<parallel>], iteration_bounds = array<i64: 2>, scalar_prefetch = 0 : i64, scratch_operands = 0 : i64, tpu.core_type = #tpu.core_type<tc>, window_params = [{transform_indices = @transform_0, window_bounds = array<i64: 8, 128>}, {pipeline_mode = #tpu.pipeline_mode<synchronous>, transform_indices = @transform_1, window_bounds = array<i64: 128, 128>}, {pipeline_mode = #tpu.pipeline_mode<synchronous>, transform_indices = @transform_2, window_bounds = array<i64: 1, 128>}, {pipeline_mode = #tpu.pipeline_mode<synchronous>, transform_indices = @transform_3, window_bounds = array<i64: 128, 128>}, {pipeline_mode = #tpu.pipeline_mode<synchronous>, transform_indices = @transform_4, window_bounds = array<i64: 1, 128>}, {pipeline_mode = #tpu.pipeline_mode<synchronous>, transform_indices = @transform_5, window_bounds = array<i64: 128, 256>}, {pipeline_mode = #tpu.pipeline_mode<synchronous>, transform_indices = @transform_6, window_bounds = array<i64: 1, 256>}, {transform_indices = @transform_7, window_bounds = array<i64: 8, 128>}]} {
    %c0 = arith.constant 0 : index
    %c0_0 = arith.constant 0 : index
    %0 = vector.load %arg1[%c0, %c0_0] : memref<8x128xf32, #tpu.memory_space<vmem>>, vector<8x128xf32>
    %c0_1 = arith.constant 0 : index
    %c0_2 = arith.constant 0 : index
    %1 = vector.load %arg2[%c0_1, %c0_2] : memref<128x128xf32, #tpu.memory_space<vmem>>, vector<128x128xf32>
    %cst = arith.constant dense<0.000000e+00> : vector<8x128xf32>
    %2 = tpu.matmul %0, %1, %cst {dimension_numbers = #tpu.dot_dimension_numbers<[1], [0], [0], [1], [0, 0, 1, 1], [], []>} : vector<8x128xf32>, vector<128x128xf32>, vector<8x128xf32> -> vector<8x128xf32>
    %c0_3 = arith.constant 0 : index
    %c0_4 = arith.constant 0 : index
    %3 = vector.load %arg3[%c0_3, %c0_4] : memref<1x128xf32, #tpu.memory_space<vmem>>, vector<1x128xf32>
    %4 = vector.broadcast %3 : vector<1x128xf32> to vector<8x128xf32>
    %5 = arith.addf %2, %4 : vector<8x128xf32>
    %6 = math.tanh %5 : vector<8x128xf32>
    %c0_5 = arith.constant 0 : index
    %c0_6 = arith.constant 0 : index
    %7 = vector.load %arg4[%c0_5, %c0_6] : memref<128x128xf32, #tpu.memory_space<vmem>>, vector<128x128xf32>
    %cst_7 = arith.constant dense<0.000000e+00> : vector<8x128xf32>
    %8 = tpu.matmul %6, %7, %cst_7 {dimension_numbers = #tpu.dot_dimension_numbers<[1], [0], [0], [1], [0, 0, 1, 1], [], []>} : vector<8x128xf32>, vector<128x128xf32>, vector<8x128xf32> -> vector<8x128xf32>
    %c0_8 = arith.constant 0 : index
    %c0_9 = arith.constant 0 : index
    %9 = vector.load %arg5[%c0_8, %c0_9] : memref<1x128xf32, #tpu.memory_space<vmem>>, vector<1x128xf32>
    %10 = vector.broadcast %9 : vector<1x128xf32> to vector<8x128xf32>
    %11 = arith.addf %8, %10 : vector<8x128xf32>
    %c0_10 = arith.constant 0 : index
    %c0_11 = arith.constant 0 : index
    %12 = vector.load %arg6[%c0_10, %c0_11] : memref<128x256xf32, #tpu.memory_space<vmem>>, vector<128x256xf32>
    %cst_12 = arith.constant dense<0.000000e+00> : vector<8x256xf32>
    %13 = tpu.matmul %11, %12, %cst_12 {dimension_numbers = #tpu.dot_dimension_numbers<[1], [0], [0], [1], [0, 0, 1, 1], [], []>} : vector<8x128xf32>, vector<128x256xf32>, vector<8x256xf32> -> vector<8x256xf32>
    %c0_13 = arith.constant 0 : index
    %c0_14 = arith.constant 0 : index
    %14 = vector.load %arg7[%c0_13, %c0_14] : memref<1x256xf32, #tpu.memory_space<vmem>>, vector<1x256xf32>
    %15 = vector.broadcast %14 : vector<1x256xf32> to vector<8x256xf32>
    %16 = arith.addf %13, %15 : vector<8x256xf32>
    %17 = vector.extract_strided_slice %16 {offsets = [0, 0], sizes = [8, 128], strides = [1, 1]} : vector<8x256xf32> to vector<8x128xf32>
    %18 = vector.extract_strided_slice %16 {offsets = [0, 128], sizes = [8, 128], strides = [1, 1]} : vector<8x256xf32> to vector<8x128xf32>
    %19 = arith.negf %18 : vector<8x128xf32>
    %20 = math.exp %19 : vector<8x128xf32>
    %cst_15 = arith.constant 1.000000e+00 : f32
    %21 = vector.broadcast %cst_15 : f32 to vector<8x128xf32>
    %22 = arith.addf %21, %20 : vector<8x128xf32>
    %23 = arith.divf %21, %22 : vector<8x128xf32>
    %24 = arith.mulf %17, %23 : vector<8x128xf32>
    %c0_16 = arith.constant 0 : index
    %c0_17 = arith.constant 0 : index
    %25 = vector.load %arg8[%c0_16, %c0_17] : memref<8x128xf32, #tpu.memory_space<vmem>>, vector<8x128xf32>
    tpu.vector_store %arg8[%c0_16, %c0_17], %24 {strides = array<i32>} : memref<8x128xf32, #tpu.memory_space<vmem>>, vector<8x128xf32>,
    return
  }
  func.func @transform_0(%arg0: i32) -> (i32, i32) {
    %c0_i32 = arith.constant 0 : i32
    %c0_i32_0 = arith.constant 0 : i32
    return %arg0, %c0_i32 : i32, i32
  }
  func.func @transform_1(%arg0: i32) -> (i32, i32) {
    %c0_i32 = arith.constant 0 : i32
    %c0_i32_0 = arith.constant 0 : i32
    %c0_i32_1 = arith.constant 0 : i32
    return %c0_i32, %c0_i32_0 : i32, i32
  }
  func.func @transform_2(%arg0: i32) -> (i32, i32) {
    %c0_i32 = arith.constant 0 : i32
    %c0_i32_0 = arith.constant 0 : i32
    %c0_i32_1 = arith.constant 0 : i32
    return %c0_i32, %c0_i32_0 : i32, i32
  }
  func.func @transform_3(%arg0: i32) -> (i32, i32) {
    %c0_i32 = arith.constant 0 : i32
    %c0_i32_0 = arith.constant 0 : i32
    %c0_i32_1 = arith.constant 0 : i32
    return %c0_i32, %c0_i32_0 : i32, i32
  }
  func.func @transform_4(%arg0: i32) -> (i32, i32) {
    %c0_i32 = arith.constant 0 : i32
    %c0_i32_0 = arith.constant 0 : i32
    %c0_i32_1 = arith.constant 0 : i32
    return %c0_i32, %c0_i32_0 : i32, i32
  }
  func.func @transform_5(%arg0: i32) -> (i32, i32) {
    %c0_i32 = arith.constant 0 : i32
    %c0_i32_0 = arith.constant 0 : i32
    %c0_i32_1 = arith.constant 0 : i32
    return %c0_i32, %c0_i32_0 : i32, i32
  }
  func.func @transform_6(%arg0: i32) -> (i32, i32) {
    %c0_i32 = arith.constant 0 : i32
    %c0_i32_0 = arith.constant 0 : i32
    %c0_i32_1 = arith.constant 0 : i32
    return %c0_i32, %c0_i32_0 : i32, i32
  }
  func.func @transform_7(%arg0: i32) -> (i32, i32) {
    %c0_i32 = arith.constant 0 : i32
    %c0_i32_0 = arith.constant 0 : i32
    return %arg0, %c0_i32 : i32, i32
  }
}

module attributes {stable_mosaic.version = 11 : i64} {
  func.func @_mlp_glu_kernel(%arg0: i32, %arg1: memref<8x128xf32, #tpu.memory_space<vmem>>, %arg2: memref<128x128xf32, #tpu.memory_space<vmem>>, %arg3: memref<1x128xf32, #tpu.memory_space<vmem>>, %arg4: memref<128x128xf32, #tpu.memory_space<vmem>>, %arg5: memref<1x128xf32, #tpu.memory_space<vmem>>, %arg6: memref<128x256xf32, #tpu.memory_space<vmem>>, %arg7: memref<1x256xf32, #tpu.memory_space<vmem>>, %arg8: memref<8x128xf32, #tpu.memory_space<vmem>>) attributes {dimension_semantics = [#tpu.dimension_semantics<parallel>], iteration_bounds = array<i64: 2>, scalar_prefetch = 0 : i64, scratch_operands = 0 : i64, tpu.core_type = #tpu.core_type<tc>, window_params = [{transform_indices = @transform_0, window_bounds = array<i64: 8, 128>}, {pipeline_mode = #tpu.pipeline_mode<synchronous>, transform_indices = @transform_1, window_bounds = array<i64: 128, 128>}, {pipeline_mode = #tpu.pipeline_mode<synchronous>, transform_indices = @transform_2, window_bounds = array<i64: 1, 128>}, {pipeline_mode = #tpu.pipeline_mode<synchronous>, transform_indices = @transform_3, window_bounds = array<i64: 128, 128>}, {pipeline_mode = #tpu.pipeline_mode<synchronous>, transform_indices = @transform_4, window_bounds = array<i64: 1, 128>}, {pipeline_mode = #tpu.pipeline_mode<synchronous>, transform_indices = @transform_5, window_bounds = array<i64: 128, 256>}, {pipeline_mode = #tpu.pipeline_mode<synchronous>, transform_indices = @transform_6, window_bounds = array<i64: 1, 256>}, {transform_indices = @transform_7, window_bounds = array<i64: 8, 128>}]} {
    %c0 = arith.constant 0 : index
    %c0_0 = arith.constant 0 : index
    %0 = vector.load %arg1[%c0, %c0_0] : memref<8x128xf32, #tpu.memory_space<vmem>>, vector<8x128xf32>
    %c0_1 = arith.constant 0 : index
    %c0_2 = arith.constant 0 : index
    %1 = vector.load %arg2[%c0_1, %c0_2] : memref<128x128xf32, #tpu.memory_space<vmem>>, vector<128x128xf32>
    %cst = arith.constant dense<0.000000e+00> : vector<8x128xf32>
    %2 = tpu.matmul %0, %1, %cst {dimension_numbers = #tpu.dot_dimension_numbers<[1], [0], [0], [1], [0, 0, 1, 1], [], []>} : vector<8x128xf32>, vector<128x128xf32>, vector<8x128xf32> -> vector<8x128xf32>
    %c0_3 = arith.constant 0 : index
    %c0_4 = arith.constant 0 : index
    %3 = vector.load %arg3[%c0_3, %c0_4] : memref<1x128xf32, #tpu.memory_space<vmem>>, vector<1x128xf32>
    %4 = vector.broadcast %3 : vector<1x128xf32> to vector<8x128xf32>
    %5 = arith.addf %2, %4 : vector<8x128xf32>
    %6 = math.tanh %5 : vector<8x128xf32>
    %c0_5 = arith.constant 0 : index
    %c0_6 = arith.constant 0 : index
    %7 = vector.load %arg4[%c0_5, %c0_6] : memref<128x128xf32, #tpu.memory_space<vmem>>, vector<128x128xf32>
    %cst_7 = arith.constant dense<0.000000e+00> : vector<8x128xf32>
    %8 = tpu.matmul %6, %7, %cst_7 {dimension_numbers = #tpu.dot_dimension_numbers<[1], [0], [0], [1], [0, 0, 1, 1], [], []>} : vector<8x128xf32>, vector<128x128xf32>, vector<8x128xf32> -> vector<8x128xf32>
    %c0_8 = arith.constant 0 : index
    %c0_9 = arith.constant 0 : index
    %9 = vector.load %arg5[%c0_8, %c0_9] : memref<1x128xf32, #tpu.memory_space<vmem>>, vector<1x128xf32>
    %10 = vector.broadcast %9 : vector<1x128xf32> to vector<8x128xf32>
    %11 = arith.addf %8, %10 : vector<8x128xf32>
    %c0_10 = arith.constant 0 : index
    %c0_11 = arith.constant 0 : index
    %12 = vector.load %arg6[%c0_10, %c0_11] : memref<128x256xf32, #tpu.memory_space<vmem>>, vector<128x256xf32>
    %cst_12 = arith.constant dense<0.000000e+00> : vector<8x256xf32>
    %13 = tpu.matmul %11, %12, %cst_12 {dimension_numbers = #tpu.dot_dimension_numbers<[1], [0], [0], [1], [0, 0, 1, 1], [], []>} : vector<8x128xf32>, vector<128x256xf32>, vector<8x256xf32> -> vector<8x256xf32>
    %c0_13 = arith.constant 0 : index
    %c0_14 = arith.constant 0 : index
    %14 = vector.load %arg7[%c0_13, %c0_14] : memref<1x256xf32, #tpu.memory_space<vmem>>, vector<1x256xf32>
    %15 = vector.broadcast %14 : vector<1x256xf32> to vector<8x256xf32>
    %16 = arith.addf %13, %15 : vector<8x256xf32>
    %17 = vector.extract_strided_slice %16 {offsets = [0, 0], sizes = [8, 128], strides = [1, 1]} : vector<8x256xf32> to vector<8x128xf32>
    %18 = vector.extract_strided_slice %16 {offsets = [0, 128], sizes = [8, 128], strides = [1, 1]} : vector<8x256xf32> to vector<8x128xf32>
    %19 = arith.negf %18 : vector<8x128xf32>
    %20 = math.exp %19 : vector<8x128xf32>
    %cst_15 = arith.constant 1.000000e+00 : f32
    %21 = vector.broadcast %cst_15 : f32 to vector<8x128xf32>
    %22 = arith.addf %21, %20 : vector<8x128xf32>
    %23 = arith.divf %21, %22 : vector<8x128xf32>
    %24 = arith.mulf %17, %23 : vector<8x128xf32>
    %c0_16 = arith.constant 0 : index
    %c0_17 = arith.constant 0 : index
    %25 = vector.load %arg8[%c0_16, %c0_17] : memref<8x128xf32, #tpu.memory_space<vmem>>, vector<8x128xf32>
    tpu.vector_store %arg8[%c0_16, %c0_17], %24 {strides = array<i32>} : memref<8x128xf32, #tpu.memory_space<vmem>>, vector<8x128xf32>,
    return
  }
  func.func @transform_0(%arg0: i32) -> (i32, i32) {
    %c0_i32 = arith.constant 0 : i32
    %c0_i32_0 = arith.constant 0 : i32
    return %arg0, %c0_i32 : i32, i32
  }
  func.func @transform_1(%arg0: i32) -> (i32, i32) {
    %c0_i32 = arith.constant 0 : i32
    %c0_i32_0 = arith.constant 0 : i32
    %c0_i32_1 = arith.constant 0 : i32
    return %c0_i32, %c0_i32_0 : i32, i32
  }
  func.func @transform_2(%arg0: i32) -> (i32, i32) {
    %c0_i32 = arith.constant 0 : i32
    %c0_i32_0 = arith.constant 0 : i32
    %c0_i32_1 = arith.constant 0 : i32
    return %c0_i32, %c0_i32_0 : i32, i32
  }
  func.func @transform_3(%arg0: i32) -> (i32, i32) {
    %c0_i32 = arith.constant 0 : i32
    %c0_i32_0 = arith.constant 0 : i32
    %c0_i32_1 = arith.constant 0 : i32
    return %c0_i32, %c0_i32_0 : i32, i32
  }
  func.func @transform_4(%arg0: i32) -> (i32, i32) {
    %c0_i32 = arith.constant 0 : i32
    %c0_i32_0 = arith.constant 0 : i32
    %c0_i32_1 = arith.constant 0 : i32
    return %c0_i32, %c0_i32_0 : i32, i32
  }
  func.func @transform_5(%arg0: i32) -> (i32, i32) {
    %c0_i32 = arith.constant 0 : i32
    %c0_i32_0 = arith.constant 0 : i32
    %c0_i32_1 = arith.constant 0 : i32
    return %c0_i32, %c0_i32_0 : i32, i32
  }
  func.func @transform_6(%arg0: i32) -> (i32, i32) {
    %c0_i32 = arith.constant 0 : i32
    %c0_i32_0 = arith.constant 0 : i32
    %c0_i32_1 = arith.constant 0 : i32
    return %c0_i32, %c0_i32_0 : i32, i32
  }
  func.func @transform_7(%arg0: i32) -> (i32, i32) {
    %c0_i32 = arith.constant 0 : i32
    %c0_i32_0 = arith.constant 0 : i32
    return %arg0, %c0_i32 : i32, i32
  }
}

</mosaic_0001>

<bundles_post_ra>
// kernel: tpu_custom_call.1
= control target key start
LH: loop header
LB: loop body
LE: loop exit
PB: predicated region body
PF: predicated region fallthrough
CT: control target
= control target key end

     0   :  { %s1435_s0 = inlined_call_operand.hbm [shape: f32[16,128], index: 0, kind: input, shape index: {}]   ;;  %s1436_s1 = inlined_call_operand.hbm [shape: f32[128,128], index: 1, kind: input, shape index: {}]   ;;  %s1437_s2 = inlined_call_operand.vmem [shape: f32[1,128], index: 2, kind: input, shape index: {}]   ;;  %s1438_s3 = inlined_call_operand.hbm [shape: f32[128,128], index: 3, kind: input, shape index: {}]   ;;  %s1439_s4 = inlined_call_operand.vmem [shape: f32[1,128], index: 4, kind: input, shape index: {}]   ;;  %s1440_s5 = inlined_call_operand.hbm [shape: f32[128,256], index: 5, kind: input, shape index: {}]   ;;  %s1441_s6 = inlined_call_operand.vmem [shape: f32[1,256], index: 6, kind: input, shape index: {}]   ;;  %s1442_s7 = inlined_call_operand.hbm [shape: f32[16,128], index: 7, kind: output, shape index: {}]  }
   0x1   :  { %1447 = sst [smem:[#allocation15_spill]] %s1436_s1 }
   0x2   :  { %1448 = sst [smem:[#allocation16_spill]] %s1438_s3 }
   0x3   :  { %12 = vsyncpa [#allocation3], 0 }
   0x4   :  { %14 = vsyncpa [#allocation3 + $0x1], 0 }
   0x5   :  { %15 = vsyncpa [#allocation6], 0 }
   0x6   :  { %16 = vsyncpa [#allocation9], 0 }
   0x7   :  { %17 = vsyncpa [#allocation4], 0 }
   0x8   :  { %19 = vsyncpa [#allocation4 + $0x1], 0  ;;  %s1207_s24 = smov 0   ;;  %s1209_s25 = smov 0  }
   0x9   :  { %s1211_s26 = smov 0   ;;  %s1213_s27 = smov 0  }
   0xa LB: > { %s1228_s28 = sadd.s32 4294967295, %s1154_s27   ;;  %s762_s29 = sadd.s32 4294967294, %s1154_s27   ;;  %s1154_s27 = sphi %s1213_s27, %s1470_s27   ;;  %s1150_s26 = sphi %s1211_s26, %s1469_s26   ;;  %s1146_s25 = sphi %s1209_s25, %s1468_s25   ;;  %s1142_s24 = sphi %s1207_s24, %s1467_s24  }
   0xb   : > { %p45_p0 = scmp.ne.s32.totalorder %s1146_s25, %s1142_s24  ;;  %p1443_p1 = scmp.eq.s32.totalorder %s1228_s28, 0 }
   0xc   : > { %p201_p3 = scmp.eq.s32.totalorder %s762_s29, 1  ;;  %p763_p5 = scmp.ge.s32.totalorder %s1154_s27, 1 }
   0xd   : > { %p1237_p4 = por %p1443_p1, %p45_p0  ;;  %p208_p7 = scmp.lt.s32.totalorder %s1154_s27, 3 }
   0xe   : > { %p1242_p6 = por %p201_p3, %p45_p0  ;;  %s1156_s10 = smov [#allocation5]  }
   0xf   : > { %s1449_s30 = scalar_select %p1237_p4, 1, 0 }
  0x10   : > { %s1450_s8 = scalar_select %p1242_p6, 1, 0 }
  0x11   : > { %p1247_p8 = pnand %p763_p5, %p208_p7  ;;  %s220_s11 = sshll.u32 %s1156_s10, 4  ;;  %s221_s11 = int_to_ptr.vmem [resolvable:$true] %s220_s11 }
  0x12   : > { %s1157_s13 = smov [#allocation7]   ;;  %s1158_s15 = smov [#allocation8]  }
  0x13   : > { %s1451_s9 = scalar_select %p1247_p8, 1, 0 }
  0x14   : > { %p903_p9 = pneg %p1247_p8  ;;  %s236_s14 = sshll.u32 %s1157_s13, 4  ;;  %s237_s14 = int_to_ptr.vmem [resolvable:$true] %s236_s14 }
  0x15   : > { %s252_s16 = sshll.u32 %s1158_s15, 4  ;;  %s987_s17 = scalar_lea.vmem %s221_s11, 2048  ;;  %s253_s16 = int_to_ptr.vmem [resolvable:$true] %s252_s16 }
  0x16   : > { %p1256_p11 = pnand %p903_p9, %p1443_p1  ;;  %p988_p13 = scmp.ne.s32.totalorder %s221_s11, %s987_s17 }
  0x17   : > { %p995_p5 = scmp.lt.s32.totalorder %s221_s11, %s221_s11  ;;  %p996_p7 = scmp.lt.s32.totalorder %s987_s17, %s987_s17 }
  0x18   : > { %p978_p12 = pneg %p1256_p11 }
  0x19   : > { %p997_p9 = por %p996_p7, %p995_p5 }
  0x1a   : > { %p990_p0 = pnand %p988_p13, %p978_p12 }
  0x1c   : > { %p991_p3 = pneg %p990_p0 }
  0x1e   : > { %p998_p10 = pnand %p997_p9, %p991_p3 }
  0x20   : > { %1001 = shalt.err (!%p998_p10)
}
  0x21   : > { %s1159_s18 = smov 128   ;;  %s1160_s19 = smov 8  }
  0x22   : > { %s1453_s1 = sld [smem:[#allocation15_spill]]  ;;  %s1013_s22 = scalar_lea.vmem %s237_s14, 2048 }
  0x23   : > { %p1014_p1 = scmp.ne.s32.totalorder %s237_s14, %s1013_s22  ;;  %p1021_p2 = scmp.lt.s32.totalorder %s237_s14, %s237_s14 }
  0x24   : > { %p1022_p6 = scmp.lt.s32.totalorder %s1013_s22, %s1013_s22 }
  0x25   : > { %p1016_p13 = pnand %p1014_p1, %p978_p12 }
  0x26   : > { %p1023_p5 = por %p1022_p6, %p1021_p2 }
  0x27   : > { %p1017_p0 = pneg %p1016_p13 }
  0x28   : > { %906 = dma.hbm_to_vmem [thread:$0]  (!%p1256_p11), %s1453_s1, 2048, %s221_s11, [#allocation6], %s1159_s18, %s1159_s18, %s1160_s19  }
  0x29   : > { %p1024_p3 = pnand %p1023_p5, %p1017_p0 }
  0x2b   : > { %1027 = shalt.err (!%p1024_p3)
}
  0x2c   : > { %s1454_s3 = sld [smem:[#allocation16_spill]]  ;;  %s1039_s10 = scalar_lea.vmem %s253_s16, 4096 }
  0x2d   : > { %p1040_p10 = scmp.ne.s32.totalorder %s253_s16, %s1039_s10  ;;  %p1047_p9 = scmp.lt.s32.totalorder %s253_s16, %s253_s16 }
  0x2e   : > { %p1048_p13 = scmp.lt.s32.totalorder %s1039_s10, %s1039_s10 }
  0x2f   : > { %p1042_p7 = pnand %p1040_p10, %p978_p12 }
  0x30   : > { %p1049_p4 = por %p1048_p13, %p1047_p9 }
  0x31   : > { %p1043_p1 = pneg %p1042_p7 }
  0x32   : > { %909 = dma.hbm_to_vmem [thread:$0]  (!%p1256_p11), %s1454_s3, 2048, %s237_s14, [#allocation6], %s1159_s18, %s1159_s18, %s1160_s19  }
  0x33   : > { %p1050_p2 = pnand %p1049_p4, %p1043_p1 }
  0x35   : > { %1053 = shalt.err (!%p1050_p2)
}
  0x36   : > { %s1161_s11 = smov 256   ;;  %s1162_s13 = smov 16  }
  0x37   : > { %912 = dma.hbm_to_vmem [thread:$0]  (!%p1256_p11), %s1440_s5, 4096, %s253_s16, [#allocation9], %s1161_s11, %s1161_s11, %s1162_s13  }
  0x38   : > { %s1287_s17 = sadd.s32 1, %s1154_s27   ;;  %s32_s19 = sadd.s32 1, %s1150_s26 }
  0x39   : > { %s29_s18 = ssub.s32 %s1154_s27, %s1287_s17  ;;  %p39_p6 = scmp.ne.s32.totalorder %s1150_s26, %s1146_s25 }
  0x3a   : > { %p30_p4 = scmp.eq.s32.totalorder %s29_s18, 0  ;;  %p40_p12 = scmp.eq.s32.totalorder %s1154_s27, 0 }
  0x3b   : > { %p924_p0 = scmp.lt.s32.totalorder %s1154_s27, 2  ;;  %p1455_p3 = scmp.eq.s32.totalorder %s1228_s28, 1 }
  0x3c   : > { %s1297_s20 = scalar_select %p30_p4, %s1150_s26, %s32_s19  }
  0x3d   : > { %p41_p5 = por %p40_p12, %p39_p6  ;;  %p1301_p10 = por %p1455_p3, %p39_p6 }
  0x3e   : > { %s269_s12 = sand.u32 1, %s1150_s26   ;;  %s769_s22 = sshll.u32 %s1154_s27, 7 }
  0x3f   : > { %s1456_s21 = scalar_select %p1301_p10, 1, 0 }
  0x40   : > { %s768_s16 = sshll.u32 %s269_s12, 3  ;;  %s1310_s10 = scalar_lea.hbm %s1435_s0, %s769_s22 }
  0x41   : > { %s273_s11 = scalar_lea.vmem [#allocation2], %s768_s16  ;;  %p1312_p11 = pnand %p924_p0, %p41_p5 }
  0x42   : > { %s280_s13 = sshll.u32 %s273_s11, 4  ;;  %s270_s15 = scalar_lea.sflag [#allocation3], %s269_s12  ;;  %s281_s13 = int_to_ptr.vmem [resolvable:$true] %s280_s13 }
  0x43   : > { %s1054_s18 = scalar_lea.hbm %s1310_s10, 128  ;;  %p1056_p1 = pneg %p1312_p11 }
  0x44   : > { %p1055_p7 = scmp.ne.s32.totalorder %s1310_s10, %s1054_s18  ;;  %s1059_s23 = scalar_lea.hbm %s1435_s0, 256 }
  0x45   : > { %p1060_p2 = scmp.lt.s32.totalorder %s1310_s10, %s1435_s0  ;;  %p1061_p4 = scmp.lt.s32.totalorder %s1059_s23, %s1054_s18 }
  0x46   : > { %p1057_p9 = pnand %p1056_p1, %p1055_p7 }
  0x47   : > { %p1062_p6 = por %p1061_p4, %p1060_p2 }
  0x48   : > { %p1058_p13 = pneg %p1057_p9 }
  0x4a   : > { %p1063_p12 = pnand %p1062_p6, %p1058_p13 }
  0x4c   : > { %1066 = shalt.err (!%p1063_p12)
}
  0x4d   : > { %s1067_s11 = scalar_lea.vmem %s281_s13, 128  ;;  %s1163_s12 = smov [#allocation2]  }
  0x4e   : > { %p1068_p0 = scmp.ne.s32.totalorder %s281_s13, %s1067_s11  ;;  %s1072_s1 = sshll.u32 %s1163_s12, 4  ;;  %s1073_s1 = int_to_ptr.vmem [resolvable:$false] %s1072_s1 }
  0x4f   : > { %s1074_s3 = scalar_lea.vmem %s1073_s1, 256  ;;  %p1075_p7 = scmp.lt.s32.totalorder %s281_s13, %s1073_s1 }
  0x50   : > { %p1070_p5 = pnand %p1068_p0, %p1056_p1  ;;  %p1076_p9 = scmp.lt.s32.totalorder %s1074_s3, %s1067_s11 }
  0x52   : > { %p1071_p3 = pneg %p1070_p5  ;;  %p1077_p10 = por %p1076_p9, %p1075_p7 }
  0x54   : > { %p1078_p8 = pnand %p1077_p10, %p1071_p3 }
  0x56   : > { %1081 = shalt.err (!%p1078_p8)
}
  0x57   : > { %916 = dma.hbm_to_vmem [thread:$0]  (!%p1312_p11), %s1310_s10, 128, %s281_s13, %s270_s15  }
  0x58   : > { %p1458_p13 = scmp.ne.s32.totalorder %s1451_s9, 0 }
  0x59   : > { %s1333_s18 = sand.u32 (!%p1458_p13), 1, %s1146_s25   ;;  %p1459_p8 = scmp.ne.s32.totalorder (!%p1458_p13), %s1449_s30, 0 }
  0x5a   : > { %289 = sbr.rel (%p1458_p13) target bundleno = 784 (0x310), region = 48  ;;  %s771_s19 = sshll.u32 (!%p1458_p13), %s1333_s18, 3 }
  0x5b   : > { %s292_s1 = scalar_lea.sflag (!%p1458_p13), [#allocation3], %s1333_s18  ;;  %s1339_s3 = scalar_lea.vmem (!%p1458_p13), [#allocation2], %s771_s19 }
  0x5f   : > { %1125 = dma.done.wait (%p1459_p8), %s292_s1, 128  }
  0x60   : > { %1127 = vsyncadd (%p1459_p8), %s292_s1, 4294967168  ;;  %p1460_p10 = scmp.eq.s32.totalorder %s1228_s28, 0 }
  0x62   : > { %1129 = dma.done.wait (%p1460_p10), [#allocation6], 4096   ;;  %p1461_p11 = pmov %p1460_p10 }
  0x63   : > { %p1462_p1 = pmov %p1460_p10 }
  0x64   : > { %1131 = vsyncadd (%p1461_p11), [#allocation6], 4294963200 }
  0x65   : > { %1133 = dma.done.wait (%p1462_p1), [#allocation9], 4096   ;;  %p1463_p2 = pmov %p1462_p1 }
  0x66   : > { %v1164_v0 = vmov 0.0   ;;  %vm1165_vm0 = vmmov 0   ;;  %v354_v1 = vld [vmem:[#allocation5 + $0x78] sm:$0xff]  ;;  %v353_v2 = vld [vmem:[#allocation5 + $0x70] sm:$0xff]  ;;  %v352_v3 = vld [vmem:[#allocation5 + $0x68] sm:$0xff]  ;;  %s780_s22 = sshll.u32 %s1228_s28, 7 }
  0x67   : > { %1135 = vsyncadd (%p1463_p2), [#allocation9], 4294963200  ;;  %817 = vmatprep.subr.mxu0 %v1164_v0  ;;  %849 = vmatprep.mubr.msk.f32.mxu0 %vm1165_vm0, %v1164_v0  ;;  %v351_v4 = vld [vmem:[#allocation5 + $0x60] sm:$0xff]  ;;  %v448_v5 = vld [vmem:[#allocation7 + $0x78] sm:$0xff]  ;;  %s337_s23 = scalar_lea.vmem [#allocation10], %s771_s19  ;;  %s661_s12 = scalar_lea.hbm %s1442_s7, %s780_s22 }
  0x68   : > { %852 = vmatprep.subr.mxu1 %v1164_v0  ;;  %884 = vmatprep.mubr.msk.f32.mxu1 %vm1165_vm0, %v1164_v0  ;;  %v350_v6 = vld [vmem:[#allocation5 + $0x58] sm:$0xff]  ;;  %v447_v7 = vld [vmem:[#allocation7 + $0x70] sm:$0xff]  ;;  %v446_v8 = vld [vmem:[#allocation7 + $0x68] sm:$0xff]  ;;  %s663_s29 = sshll.u32 %s337_s23, 4  ;;  %s650_s1 = scalar_lea.sflag [#allocation4], %s1333_s18  ;;  %s664_s29 = int_to_ptr.vmem [resolvable:$true] %s663_s29 }
  0x69   : > { %818 = vmatpush3.msra.mxu0 %v354_v1  ;;  %853 = vmatpush3.msra.mxu1 %v448_v5  ;;  %v349_v9 = vld [vmem:[#allocation5 + $0x50] sm:$0xff]  ;;  %v445_v10 = vld [vmem:[#allocation7 + $0x60] sm:$0xff]  ;;  %v348_v11 = vld [vmem:[#allocation5 + $0x48] sm:$0xff]  ;;  %p1464_p6 = scmp.ne.s32.totalorder %s1456_s21, 0  ;;  %s1166_s30 = smov [#allocation10]  }
  0x6a   : > { %819 = vmatprep.subr.mxu0 %v1164_v0  ;;  %854 = vmatprep.subr.mxu1 %v1164_v0  ;;  %v444_v12 = vld [vmem:[#allocation7 + $0x58] sm:$0xff]  ;;  %v347_v13 = vld [vmem:[#allocation5 + $0x40] sm:$0xff]  ;;  %v443_v14 = vld [vmem:[#allocation7 + $0x50] sm:$0xff]  ;;  %s1086_s28 = sshll.u32 %s1166_s30, 4  ;;  %s1087_s28 = int_to_ptr.vmem [resolvable:$false] %s1086_s28 }
  0x6b   : > { %820 = vmatpush3.msra.mxu0 %v353_v2  ;;  %855 = vmatpush3.msra.mxu1 %v447_v7  ;;  %v346_v15 = vld [vmem:[#allocation5 + $0x38] sm:$0xff]  ;;  %v442_v16 = vld [vmem:[#allocation7 + $0x48] sm:$0xff]  ;;  %v345_v17 = vld [vmem:[#allocation5 + $0x30] sm:$0xff]  ;;  %s1088_s19 = scalar_lea.vmem %s1087_s28, 256  ;;  %p1089_p5 = scmp.lt.s32.totalorder %s664_s29, %s1087_s28 }
  0x6c   : > { %821 = vmatprep.subr.mxu0 %v1164_v0  ;;  %856 = vmatprep.subr.mxu1 %v1164_v0  ;;  %v344_v18 = vld [vmem:[#allocation5 + $0x28] sm:$0xff]  ;;  %v343_v19 = vld [vmem:[#allocation5 + $0x20] sm:$0xff]  ;;  %v342_v20 = vld [vmem:[#allocation5 + $0x18] sm:$0xff] }
  0x6d   : > { %822 = vmatpush3.msra.mxu0 %v352_v3  ;;  %857 = vmatpush3.msra.mxu1 %v446_v8  ;;  %v341_v21 = vld [vmem:[#allocation5 + $0x10] sm:$0xff]  ;;  %v340_v22 = vld [vmem:[#allocation5 + $0x8] sm:$0xff]  ;;  %v339_v23 = vld [vmem:[#allocation5] sm:$0xff] }
  0x6e   : > { %823 = vmatprep.subr.mxu0 %v1164_v0  ;;  %858 = vmatprep.subr.mxu1 %v1164_v0  ;;  %v338_v24 = vld [vmem:[%s1339_s3] sm:$0xff]  ;;  %v441_v25 = vld [vmem:[#allocation7 + $0x40] sm:$0xff]  ;;  %v438_v28 = vld [vmem:[#allocation7 + $0x28] sm:$0xff]  ;;  %s1082_s3 = scalar_lea.vmem %s664_s29, 128 }
  0x6f   : > { %824 = vmatpush3.msra.mxu0 %v351_v4  ;;  %859 = vmatpush3.msra.mxu1 %v445_v10  ;;  %v440_v26 = vld [vmem:[#allocation7 + $0x38] sm:$0xff]  ;;  %v439_v27 = vld [vmem:[#allocation7 + $0x30] sm:$0xff]  ;;  %v437_v29 = vld [vmem:[#allocation7 + $0x20] sm:$0xff]  ;;  %p1083_p4 = scmp.ne.s32.totalorder %s664_s29, %s1082_s3  ;;  %p1090_p3 = scmp.lt.s32.totalorder %s1088_s19, %s1082_s3 }
  0x70   : > { %825 = vmatprep.subr.mxu0 %v1164_v0  ;;  %860 = vmatprep.subr.mxu1 %v1164_v0  ;;  %v436_v30 = vld [vmem:[#allocation7 + $0x18] sm:$0xff]  ;;  %v435_v31 = vld [vmem:[#allocation7 + $0x10] sm:$0xff]  ;;  %v434_v32 = vld [vmem:[#allocation7 + $0x8] sm:$0xff] }
  0x71   : > { %826 = vmatpush3.msra.mxu0 %v350_v6  ;;  %861 = vmatpush3.msra.mxu1 %v444_v12  ;;  %v433_v33 = vld [vmem:[#allocation7] sm:$0xff]  ;;  %v557_v34 = vld [vmem:[#allocation8 + $0xf8] sm:$0xff]  ;;  %v556_v35 = vld [vmem:[#allocation8 + $0xf0] sm:$0xff]  ;;  %p1084_p12 = pnand %p1083_p4, %p1464_p6  ;;  %p1091_p7 = por %p1090_p3, %p1089_p5 }
  0x72   : > { %827 = vmatprep.subr.mxu0 %v1164_v0  ;;  %862 = vmatprep.subr.mxu1 %v1164_v0  ;;  %v555_v36 = vld [vmem:[#allocation8 + $0xe8] sm:$0xff]  ;;  %v554_v37 = vld [vmem:[#allocation8 + $0xe0] sm:$0xff]  ;;  %v553_v38 = vld [vmem:[#allocation8 + $0xd8] sm:$0xff] }
  0x73   : > { %828 = vmatpush3.msra.mxu0 %v349_v9  ;;  %863 = vmatpush3.msra.mxu1 %v443_v14  ;;  %v552_v39 = vld [vmem:[#allocation8 + $0xd0] sm:$0xff]  ;;  %v551_v40 = vld [vmem:[#allocation8 + $0xc8] sm:$0xff]  ;;  %v550_v41 = vld [vmem:[#allocation8 + $0xc0] sm:$0xff]  ;;  %p1085_p0 = pneg %p1084_p12 }
  0x74   : > { %829 = vmatprep.subr.mxu0 %v1164_v0  ;;  %864 = vmatprep.subr.mxu1 %v1164_v0  ;;  %v549_v42 = vld [vmem:[#allocation8 + $0xb8] sm:$0xff]  ;;  %v548_v43 = vld [vmem:[#allocation8 + $0xb0] sm:$0xff]  ;;  %v547_v44 = vld [vmem:[#allocation8 + $0xa8] sm:$0xff] }
  0x75   : > { %830 = vmatpush3.msra.mxu0 %v348_v11  ;;  %865 = vmatpush3.msra.mxu1 %v442_v16  ;;  %v546_v45 = vld [vmem:[#allocation8 + $0xa0] sm:$0xff]  ;;  %v545_v46 = vld [vmem:[#allocation8 + $0x98] sm:$0xff]  ;;  %v544_v47 = vld [vmem:[#allocation8 + $0x90] sm:$0xff]  ;;  %v560_v11 = vlaneseq  ;;  %p1092_p9 = pnand %p1091_p7, %p1085_p0 }
  0x76   : > { %831 = vmatprep.subr.mxu0 %v1164_v0  ;;  %866 = vmatprep.subr.mxu1 %v1164_v0  ;;  %v543_v48 = vld [vmem:[#allocation8 + $0x88] sm:$0xff]  ;;  %v542_v49 = vld [vmem:[#allocation8 + $0x80] sm:$0xff]  ;;  %v541_v50 = vld [vmem:[#allocation8 + $0x78] sm:$0xff] }
  0x77   : > { %832 = vmatpush3.msra.mxu0 %v347_v13  ;;  %867 = vmatpush3.msra.mxu1 %v441_v25  ;;  %v540_v51 = vld [vmem:[#allocation8 + $0x70] sm:$0xff]  ;;  %v539_v52 = vld [vmem:[#allocation8 + $0x68] sm:$0xff]  ;;  %v538_v53 = vld [vmem:[#allocation8 + $0x60] sm:$0xff]  ;;  %v561_v12 = vshrl.u32 %v560_v11, 7 }
  0x78   : > { %833 = vmatprep.subr.mxu0 %v1164_v0  ;;  %868 = vmatprep.subr.mxu1 %v1164_v0  ;;  %v537_v54 = vld [vmem:[#allocation8 + $0x58] sm:$0xff]  ;;  %v536_v55 = vld [vmem:[#allocation8 + $0x50] sm:$0xff]  ;;  %v535_v56 = vld [vmem:[#allocation8 + $0x48] sm:$0xff] }
  0x79   : > { %834 = vmatpush3.msra.mxu0 %v346_v15  ;;  %869 = vmatpush3.msra.mxu1 %v440_v26  ;;  %v534_v57 = vld [vmem:[#allocation8 + $0x40] sm:$0xff]  ;;  %v533_v58 = vld [vmem:[#allocation8 + $0x38] sm:$0xff]  ;;  %v532_v59 = vld [vmem:[#allocation8 + $0x30] sm:$0xff]  ;;  %v566_v13 = vsub.s32 1, %v561_v12 }
  0x7a   : > { %835 = vmatprep.subr.mxu0 %v1164_v0  ;;  %870 = vmatprep.subr.mxu1 %v1164_v0  ;;  %v531_v60 = vld [vmem:[#allocation8 + $0x28] sm:$0xff]  ;;  %v530_v61 = vld [vmem:[#allocation8 + $0x20] sm:$0xff]  ;;  %v529_v62 = vld [vmem:[#allocation8 + $0x18] sm:$0xff] }
  0x7b   : > { %836 = vmatpush3.msra.mxu0 %v345_v17  ;;  %871 = vmatpush3.msra.mxu1 %v439_v27  ;;  %v776_v63 = vld [vmem:[%s1437_s2] ss:$0 sm:$0xff]  ;;  %v527_v5 = vld [vmem:[#allocation8 + $0x8] sm:$0xff]  ;;  %v526_v6 = vld [vmem:[#allocation8] sm:$0xff] }
  0x7c   : > { %837 = vmatprep.subr.mxu0 %v1164_v0  ;;  %872 = vmatprep.subr.mxu1 %v1164_v0  ;;  %v528_v4 = vld [vmem:[#allocation8 + $0x10] sm:$0xff] }
  0x7d   : > { %838 = vmatpush3.msra.mxu0 %v344_v18  ;;  %873 = vmatpush3.msra.mxu1 %v438_v28  ;;  %v777_v7 = vld [vmem:[%s1439_s4] ss:$0 sm:$0xff] }
  0x7e   : > { %839 = vmatprep.subr.mxu0 %v1164_v0  ;;  %874 = vmatprep.subr.mxu1 %v1164_v0  ;;  %v558_v14 = vld [vmem:[%s1441_s6] sm:$0x3] }
  0x7f   : > { %840 = vmatpush3.msra.mxu0 %v343_v19  ;;  %875 = vmatpush3.msra.mxu1 %v437_v29  ;;  %v567_v15 = vrot.slane %v558_v14, %v566_v13 }
  0x80   : > { %841 = vmatprep.subr.mxu0 %v1164_v0  ;;  %876 = vmatprep.subr.mxu1 %v1164_v0 }
  0x81   : > { %842 = vmatpush3.msra.mxu0 %v342_v20  ;;  %877 = vmatpush3.msra.mxu1 %v436_v30 }
  0x82   : > { %843 = vmatprep.subr.mxu0 %v1164_v0  ;;  %878 = vmatprep.subr.mxu1 %v1164_v0 }
  0x83   : > { %844 = vmatpush3.msra.mxu0 %v341_v21  ;;  %879 = vmatpush3.msra.mxu1 %v435_v31 }
  0x84   : > { %845 = vmatprep.subr.mxu0 %v1164_v0  ;;  %880 = vmatprep.subr.mxu1 %v1164_v0 }
  0x85   : > { %846 = vmatpush3.msra.mxu0 %v340_v22  ;;  %881 = vmatpush3.msra.mxu1 %v434_v32  ;;  %v562_v22 = vsub.s32 0, %v561_v12 }
  0x86   : > { %847 = vmatprep.subr.mxu0 %v1164_v0  ;;  %882 = vmatprep.subr.mxu1 %v1164_v0 }
  0x87   : > { %848 = vmatpush3.msra.mxu0 %v339_v23  ;;  %883 = vmatpush3.msra.mxu1 %v433_v33  ;;  %v563_v23 = vrot.slane %v558_v14, %v562_v22 }
  0x88   : > { %850 = vmatmul.mubr.f32.vlgmr.msra.gmra.mxu0 %v338_v24  ;;  %570 = vmatprep.subr.mxu0 %v557_v34 }
  0x89   : > { %634 = vmatprep.mubr.f32.mxu0 %v1164_v0  ;;  %571 = vmatpush1.msra.mxu0 %v556_v35 }
  0x8a   : > { %572 = vmatprep.subr.mxu0 %v555_v36 }
  0x8b   : > { %573 = vmatpush1.msra.mxu0 %v554_v37 }
  0x8c   : > { %574 = vmatprep.subr.mxu0 %v553_v38 }
  0x8d   : > { %575 = vmatpush1.msra.mxu0 %v552_v39 }
  0x8e   : > { %576 = vmatprep.subr.mxu0 %v551_v40 }
  0x8f   : > { %577 = vmatpush1.msra.mxu0 %v550_v41 }
  0x90   : > { %578 = vmatprep.subr.mxu0 %v549_v42 }
  0x91   : > { %579 = vmatpush1.msra.mxu0 %v548_v43 }
  0x92   : > { %580 = vmatprep.subr.mxu0 %v547_v44 }
  0x93   : > { %581 = vmatpush1.msra.mxu0 %v546_v45 }
  0x94   : > { %582 = vmatprep.subr.mxu0 %v545_v46 }
  0x95   : > { %583 = vmatpush1.msra.mxu0 %v544_v47 }
  0x96   : > { %584 = vmatprep.subr.mxu0 %v543_v48 }
  0x97   : > { %585 = vmatpush1.msra.mxu0 %v542_v49 }
  0x98   : > { %586 = vmatprep.subr.mxu0 %v541_v50 }
  0x99   : > { %587 = vmatpush1.msra.mxu0 %v540_v51 }
  0x9a   : > { %588 = vmatprep.subr.mxu0 %v539_v52 }
  0x9b   : > { %589 = vmatpush1.msra.mxu0 %v538_v53 }
  0x9c   : > { %590 = vmatprep.subr.mxu0 %v537_v54 }
  0x9d   : > { %591 = vmatpush1.msra.mxu0 %v536_v55 }
  0x9e   : > { %592 = vmatprep.subr.mxu0 %v535_v56 }
  0x9f   : > { %593 = vmatpush1.msra.mxu0 %v534_v57 }
  0xa0   : > { %594 = vmatprep.subr.mxu0 %v533_v58 }
  0xa1   : > { %595 = vmatpush1.msra.mxu0 %v532_v59 }
  0xa2   : > { %596 = vmatprep.subr.mxu0 %v531_v60 }
  0xa3   : > { %597 = vmatpush1.msra.mxu0 %v530_v61 }
  0xa4   : > { %598 = vmatprep.subr.mxu0 %v529_v62 }
  0xa5   : > { %599 = vmatpush1.msra.mxu0 %v528_v4 }
  0xa6   : > { %600 = vmatprep.subr.mxu0 %v527_v5 }
  0xa7   : > { %601 = vmatpush1.msra.mxu0 %v526_v6 }
 0x148   : > { %v428_v0 = vpop.f32.mrf.mxu0 }
 0x149   : > { %v429_v1 = vadd.f32 %v776_v63, %v428_v0 }
 0x14a   : > { %v851_v2 = vpop.f32.mrf.mxu0 }
 0x14b   : > { %970 = vtanh.f32 %v429_v1 }
 0x158   : > { %v971_v3 = vpop.eup %970 }
 0x159   : > { %885 = vmatmul.mubr.f32.vlgmr.msra.gmra.mxu1 %v971_v3 }
 0x219   : > { %v522_v8 = vpop.f32.mrf.mxu1 }
 0x21a   : > { %v523_v9 = vadd.f32 %v777_v7, %v522_v8 }
 0x21b   : > { %v886_v10 = vpop.f32.mrf.mxu1 }
 0x21c   : > { %635 = vmatmul.mubr.f32.vlgmr.msra.gmra.mxu0 %v523_v9 }
 0x2dc   : > { %v636_v16 = vpop.f32.mrf.mxu0 }
 0x2dd   : > { %v637_v24 = vadd.f32 %v636_v16, %v563_v23 }
 0x2de   : > { %v638_v17 = vpop.f32.mrf.mxu0 }
 0x2df   : > { %v639_v18 = vadd.f32 %v638_v17, %v567_v15 }
 0x2e1   : > { %v778_v19 = vmul.f32 -1.442695, %v639_v18 }
 0x2e3   : > { %972 = vpow2.f32 %v778_v19 }
 0x2f0   : > { %v973_v20 = vpop.eup %972 }
 0x2f1   : > { %v644_v21 = vadd.f32 1.0, %v973_v20 }
 0x2f3   : > { %974 = vrcp.f32 %v644_v21 }
 0x300   : > { %v975_v25 = vpop.eup %974 }
 0x301   : > { %v647_v26 = vmul.f32 %v975_v25, %v637_v24 }
 0x303   : > { %648 = vst [vmem:[%s337_s23] sm:$0xff] %v647_v26 }
 0x304   : > { %1095 = shalt.err (!%p1092_p9)
}
 0x305   : > { %s1096_s9 = scalar_lea.hbm %s661_s12, 128  ;;  %s1100_s13 = scalar_lea.hbm %s1442_s7, 256 }
 0x306   : > { %p1097_p13 = scmp.ne.s32.totalorder %s661_s12, %s1096_s9  ;;  %p1101_p11 = scmp.lt.s32.totalorder %s661_s12, %s1442_s7 }
 0x307   : > { %p1102_p1 = scmp.lt.s32.totalorder %s1100_s13, %s1096_s9 }
 0x308   : > { %p1098_p8 = pnand %p1097_p13, %p1464_p6 }
 0x309   : > { %p1103_p2 = por %p1102_p1, %p1101_p11 }
 0x30a   : > { %p1099_p10 = pneg %p1098_p8 }
 0x30c   : > { %p1104_p4 = pnand %p1103_p2, %p1099_p10 }
 0x30e   : > { %1107 = shalt.err (!%p1104_p4)
}
 0x30f   : > { %901 = dma.vmem_to_hbm [thread:$0]  (%p1464_p6), %s664_s29, 128, %s661_s12, %s650_s1  }
 0x310 PF: > { %s675_s22 = sand.u32 1, %s1142_s24   ;;  %p1465_p12 = scmp.ne.s32.totalorder %s1450_s8, 0 }
 0x311   : > { %p1466_p0 = scmp.ge.s32.totalorder %s1154_s27, 2  ;;  %s676_s23 = scalar_lea.sflag [#allocation4], %s675_s22 }
 0x313   : > { %p918_p5 = pnand %p1466_p0, %p1465_p12 }
 0x315   : > { %p919_p3 = pneg %p918_p5 }
 0x317   : > { %1137 = dma.done.wait (%p919_p3), %s676_s23, 128  }
 0x318   : > { %1139 = vsyncadd (%p919_p3), %s676_s23, 4294967168  ;;  %p22_p7 = scmp.ge.s32.totalorder %s1287_s17, 4   ;;  %s1467_s24 = smov %s1146_s25 }
 0x319   : > { %s1468_s25 = smov %s1150_s26  ;;  %s1469_s26 = smov %s1297_s20 }
 0x31a   : > { %s1470_s27 = smov %s1287_s17  ;;  %24 = sbr.rel (!%p22_p7) target bundleno = 10 (0xa), region = 105 }
 0x31f   :  { %681 = vsyncpa [#allocation3], 1 }
 0x320   :  { %683 = vsyncpa [#allocation3 + $0x1], 1 }
 0x321   :  { %684 = vsyncpa [#allocation6], 1 }
 0x322   :  { %685 = vsyncpa [#allocation9], 1 }
 0x323   :  { %686 = vsyncpa [#allocation4], 1 }
 0x324   :  { %688 = vsyncpa [#allocation4 + $0x1], 1 }

// kernel: tpu_custom_call.1
= control target key start
LH: loop header
LB: loop body
LE: loop exit
PB: predicated region body
PF: predicated region fallthrough
CT: control target
= control target key end

     0   :  { %s1435_s0 = inlined_call_operand.hbm [shape: f32[16,128], index: 0, kind: input, shape index: {}]   ;;  %s1436_s1 = inlined_call_operand.hbm [shape: f32[128,128], index: 1, kind: input, shape index: {}]   ;;  %s1437_s2 = inlined_call_operand.vmem [shape: f32[1,128], index: 2, kind: input, shape index: {}]   ;;  %s1438_s3 = inlined_call_operand.hbm [shape: f32[128,128], index: 3, kind: input, shape index: {}]   ;;  %s1439_s4 = inlined_call_operand.vmem [shape: f32[1,128], index: 4, kind: input, shape index: {}]   ;;  %s1440_s5 = inlined_call_operand.hbm [shape: f32[128,256], index: 5, kind: input, shape index: {}]   ;;  %s1441_s6 = inlined_call_operand.vmem [shape: f32[1,256], index: 6, kind: input, shape index: {}]   ;;  %s1442_s7 = inlined_call_operand.hbm [shape: f32[16,128], index: 7, kind: output, shape index: {}]  }
   0x1   :  { %1447 = sst [smem:[#allocation15_spill]] %s1436_s1 }
   0x2   :  { %1448 = sst [smem:[#allocation16_spill]] %s1438_s3 }
   0x3   :  { %12 = vsyncpa [#allocation3], 0 }
   0x4   :  { %14 = vsyncpa [#allocation3 + $0x1], 0 }
   0x5   :  { %15 = vsyncpa [#allocation6], 0 }
   0x6   :  { %16 = vsyncpa [#allocation9], 0 }
   0x7   :  { %17 = vsyncpa [#allocation4], 0 }
   0x8   :  { %19 = vsyncpa [#allocation4 + $0x1], 0  ;;  %s1207_s24 = smov 0   ;;  %s1209_s25 = smov 0  }
   0x9   :  { %s1211_s26 = smov 0   ;;  %s1213_s27 = smov 0  }
   0xa LB: > { %s1228_s28 = sadd.s32 4294967295, %s1154_s27   ;;  %s762_s29 = sadd.s32 4294967294, %s1154_s27   ;;  %s1154_s27 = sphi %s1213_s27, %s1470_s27   ;;  %s1150_s26 = sphi %s1211_s26, %s1469_s26   ;;  %s1146_s25 = sphi %s1209_s25, %s1468_s25   ;;  %s1142_s24 = sphi %s1207_s24, %s1467_s24  }
   0xb   : > { %p45_p0 = scmp.ne.s32.totalorder %s1146_s25, %s1142_s24  ;;  %p1443_p1 = scmp.eq.s32.totalorder %s1228_s28, 0 }
   0xc   : > { %p201_p3 = scmp.eq.s32.totalorder %s762_s29, 1  ;;  %p763_p5 = scmp.ge.s32.totalorder %s1154_s27, 1 }
   0xd   : > { %p1237_p4 = por %p1443_p1, %p45_p0  ;;  %p208_p7 = scmp.lt.s32.totalorder %s1154_s27, 3 }
   0xe   : > { %p1242_p6 = por %p201_p3, %p45_p0  ;;  %s1156_s10 = smov [#allocation5]  }
   0xf   : > { %s1449_s30 = scalar_select %p1237_p4, 1, 0 }
  0x10   : > { %s1450_s8 = scalar_select %p1242_p6, 1, 0 }
  0x11   : > { %p1247_p8 = pnand %p763_p5, %p208_p7  ;;  %s220_s11 = sshll.u32 %s1156_s10, 4  ;;  %s221_s11 = int_to_ptr.vmem [resolvable:$true] %s220_s11 }
  0x12   : > { %s1157_s13 = smov [#allocation7]   ;;  %s1158_s15 = smov [#allocation8]  }
  0x13   : > { %s1451_s9 = scalar_select %p1247_p8, 1, 0 }
  0x14   : > { %p903_p9 = pneg %p1247_p8  ;;  %s236_s14 = sshll.u32 %s1157_s13, 4  ;;  %s237_s14 = int_to_ptr.vmem [resolvable:$true] %s236_s14 }
  0x15   : > { %s252_s16 = sshll.u32 %s1158_s15, 4  ;;  %s987_s17 = scalar_lea.vmem %s221_s11, 2048  ;;  %s253_s16 = int_to_ptr.vmem [resolvable:$true] %s252_s16 }
  0x16   : > { %p1256_p11 = pnand %p903_p9, %p1443_p1  ;;  %p988_p13 = scmp.ne.s32.totalorder %s221_s11, %s987_s17 }
  0x17   : > { %p995_p5 = scmp.lt.s32.totalorder %s221_s11, %s221_s11  ;;  %p996_p7 = scmp.lt.s32.totalorder %s987_s17, %s987_s17 }
  0x18   : > { %p978_p12 = pneg %p1256_p11 }
  0x19   : > { %p997_p9 = por %p996_p7, %p995_p5 }
  0x1a   : > { %p990_p0 = pnand %p988_p13, %p978_p12 }
  0x1c   : > { %p991_p3 = pneg %p990_p0 }
  0x1e   : > { %p998_p10 = pnand %p997_p9, %p991_p3 }
  0x20   : > { %1001 = shalt.err (!%p998_p10)
}
  0x21   : > { %s1159_s18 = smov 128   ;;  %s1160_s19 = smov 8  }
  0x22   : > { %s1453_s1 = sld [smem:[#allocation15_spill]]  ;;  %s1013_s22 = scalar_lea.vmem %s237_s14, 2048 }
  0x23   : > { %p1014_p1 = scmp.ne.s32.totalorder %s237_s14, %s1013_s22  ;;  %p1021_p2 = scmp.lt.s32.totalorder %s237_s14, %s237_s14 }
  0x24   : > { %p1022_p6 = scmp.lt.s32.totalorder %s1013_s22, %s1013_s22 }
  0x25   : > { %p1016_p13 = pnand %p1014_p1, %p978_p12 }
  0x26   : > { %p1023_p5 = por %p1022_p6, %p1021_p2 }
  0x27   : > { %p1017_p0 = pneg %p1016_p13 }
  0x28   : > { %906 = dma.hbm_to_vmem [thread:$0]  (!%p1256_p11), %s1453_s1, 2048, %s221_s11, [#allocation6], %s1159_s18, %s1159_s18, %s1160_s19  }
  0x29   : > { %p1024_p3 = pnand %p1023_p5, %p1017_p0 }
  0x2b   : > { %1027 = shalt.err (!%p1024_p3)
}
  0x2c   : > { %s1454_s3 = sld [smem:[#allocation16_spill]]  ;;  %s1039_s10 = scalar_lea.vmem %s253_s16, 4096 }
  0x2d   : > { %p1040_p10 = scmp.ne.s32.totalorder %s253_s16, %s1039_s10  ;;  %p1047_p9 = scmp.lt.s32.totalorder %s253_s16, %s253_s16 }
  0x2e   : > { %p1048_p13 = scmp.lt.s32.totalorder %s1039_s10, %s1039_s10 }
  0x2f   : > { %p1042_p7 = pnand %p1040_p10, %p978_p12 }
  0x30   : > { %p1049_p4 = por %p1048_p13, %p1047_p9 }
  0x31   : > { %p1043_p1 = pneg %p1042_p7 }
  0x32   : > { %909 = dma.hbm_to_vmem [thread:$0]  (!%p1256_p11), %s1454_s3, 2048, %s237_s14, [#allocation6], %s1159_s18, %s1159_s18, %s1160_s19  }
  0x33   : > { %p1050_p2 = pnand %p1049_p4, %p1043_p1 }
  0x35   : > { %1053 = shalt.err (!%p1050_p2)
}
  0x36   : > { %s1161_s11 = smov 256   ;;  %s1162_s13 = smov 16  }
  0x37   : > { %912 = dma.hbm_to_vmem [thread:$0]  (!%p1256_p11), %s1440_s5, 4096, %s253_s16, [#allocation9], %s1161_s11, %s1161_s11, %s1162_s13  }
  0x38   : > { %s1287_s17 = sadd.s32 1, %s1154_s27   ;;  %s32_s19 = sadd.s32 1, %s1150_s26 }
  0x39   : > { %s29_s18 = ssub.s32 %s1154_s27, %s1287_s17  ;;  %p39_p6 = scmp.ne.s32.totalorder %s1150_s26, %s1146_s25 }
  0x3a   : > { %p30_p4 = scmp.eq.s32.totalorder %s29_s18, 0  ;;  %p40_p12 = scmp.eq.s32.totalorder %s1154_s27, 0 }
  0x3b   : > { %p924_p0 = scmp.lt.s32.totalorder %s1154_s27, 2  ;;  %p1455_p3 = scmp.eq.s32.totalorder %s1228_s28, 1 }
  0x3c   : > { %s1297_s20 = scalar_select %p30_p4, %s1150_s26, %s32_s19  }
  0x3d   : > { %p41_p5 = por %p40_p12, %p39_p6  ;;  %p1301_p10 = por %p1455_p3, %p39_p6 }
  0x3e   : > { %s269_s12 = sand.u32 1, %s1150_s26   ;;  %s769_s22 = sshll.u32 %s1154_s27, 7 }
  0x3f   : > { %s1456_s21 = scalar_select %p1301_p10, 1, 0 }
  0x40   : > { %s768_s16 = sshll.u32 %s269_s12, 3  ;;  %s1310_s10 = scalar_lea.hbm %s1435_s0, %s769_s22 }
  0x41   : > { %s273_s11 = scalar_lea.vmem [#allocation2], %s768_s16  ;;  %p1312_p11 = pnand %p924_p0, %p41_p5 }
  0x42   : > { %s280_s13 = sshll.u32 %s273_s11, 4  ;;  %s270_s15 = scalar_lea.sflag [#allocation3], %s269_s12  ;;  %s281_s13 = int_to_ptr.vmem [resolvable:$true] %s280_s13 }
  0x43   : > { %s1054_s18 = scalar_lea.hbm %s1310_s10, 128  ;;  %p1056_p1 = pneg %p1312_p11 }
  0x44   : > { %p1055_p7 = scmp.ne.s32.totalorder %s1310_s10, %s1054_s18  ;;  %s1059_s23 = scalar_lea.hbm %s1435_s0, 256 }
  0x45   : > { %p1060_p2 = scmp.lt.s32.totalorder %s1310_s10, %s1435_s0  ;;  %p1061_p4 = scmp.lt.s32.totalorder %s1059_s23, %s1054_s18 }
  0x46   : > { %p1057_p9 = pnand %p1056_p1, %p1055_p7 }
  0x47   : > { %p1062_p6 = por %p1061_p4, %p1060_p2 }
  0x48   : > { %p1058_p13 = pneg %p1057_p9 }
  0x4a   : > { %p1063_p12 = pnand %p1062_p6, %p1058_p13 }
  0x4c   : > { %1066 = shalt.err (!%p1063_p12)
}
  0x4d   : > { %s1067_s11 = scalar_lea.vmem %s281_s13, 128  ;;  %s1163_s12 = smov [#allocation2]  }
  0x4e   : > { %p1068_p0 = scmp.ne.s32.totalorder %s281_s13, %s1067_s11  ;;  %s1072_s1 = sshll.u32 %s1163_s12, 4  ;;  %s1073_s1 = int_to_ptr.vmem [resolvable:$false] %s1072_s1 }
  0x4f   : > { %s1074_s3 = scalar_lea.vmem %s1073_s1, 256  ;;  %p1075_p7 = scmp.lt.s32.totalorder %s281_s13, %s1073_s1 }
  0x50   : > { %p1070_p5 = pnand %p1068_p0, %p1056_p1  ;;  %p1076_p9 = scmp.lt.s32.totalorder %s1074_s3, %s1067_s11 }
  0x52   : > { %p1071_p3 = pneg %p1070_p5  ;;  %p1077_p10 = por %p1076_p9, %p1075_p7 }
  0x54   : > { %p1078_p8 = pnand %p1077_p10, %p1071_p3 }
  0x56   : > { %1081 = shalt.err (!%p1078_p8)
}
  0x57   : > { %916 = dma.hbm_to_vmem [thread:$0]  (!%p1312_p11), %s1310_s10, 128, %s281_s13, %s270_s15  }
  0x58   : > { %p1458_p13 = scmp.ne.s32.totalorder %s1451_s9, 0 }
  0x59   : > { %s1333_s18 = sand.u32 (!%p1458_p13), 1, %s1146_s25   ;;  %p1459_p8 = scmp.ne.s32.totalorder (!%p1458_p13), %s1449_s30, 0 }
  0x5a   : > { %289 = sbr.rel (%p1458_p13) target bundleno = 784 (0x310), region = 48  ;;  %s771_s19 = sshll.u32 (!%p1458_p13), %s1333_s18, 3 }
  0x5b   : > { %s292_s1 = scalar_lea.sflag (!%p1458_p13), [#allocation3], %s1333_s18  ;;  %s1339_s3 = scalar_lea.vmem (!%p1458_p13), [#allocation2], %s771_s19 }
  0x5f   : > { %1125 = dma.done.wait (%p1459_p8), %s292_s1, 128  }
  0x60   : > { %1127 = vsyncadd (%p1459_p8), %s292_s1, 4294967168  ;;  %p1460_p10 = scmp.eq.s32.totalorder %s1228_s28, 0 }
  0x62   : > { %1129 = dma.done.wait (%p1460_p10), [#allocation6], 4096   ;;  %p1461_p11 = pmov %p1460_p10 }
  0x63   : > { %p1462_p1 = pmov %p1460_p10 }
  0x64   : > { %1131 = vsyncadd (%p1461_p11), [#allocation6], 4294963200 }
  0x65   : > { %1133 = dma.done.wait (%p1462_p1), [#allocation9], 4096   ;;  %p1463_p2 = pmov %p1462_p1 }
  0x66   : > { %v1164_v0 = vmov 0.0   ;;  %vm1165_vm0 = vmmov 0   ;;  %v354_v1 = vld [vmem:[#allocation5 + $0x78] sm:$0xff]  ;;  %v353_v2 = vld [vmem:[#allocation5 + $0x70] sm:$0xff]  ;;  %v352_v3 = vld [vmem:[#allocation5 + $0x68] sm:$0xff]  ;;  %s780_s22 = sshll.u32 %s1228_s28, 7 }
  0x67   : > { %1135 = vsyncadd (%p1463_p2), [#allocation9], 4294963200  ;;  %817 = vmatprep.subr.mxu0 %v1164_v0  ;;  %849 = vmatprep.mubr.msk.f32.mxu0 %vm1165_vm0, %v1164_v0  ;;  %v351_v4 = vld [vmem:[#allocation5 + $0x60] sm:$0xff]  ;;  %v448_v5 = vld [vmem:[#allocation7 + $0x78] sm:$0xff]  ;;  %s337_s23 = scalar_lea.vmem [#allocation10], %s771_s19  ;;  %s661_s12 = scalar_lea.hbm %s1442_s7, %s780_s22 }
  0x68   : > { %852 = vmatprep.subr.mxu1 %v1164_v0  ;;  %884 = vmatprep.mubr.msk.f32.mxu1 %vm1165_vm0, %v1164_v0  ;;  %v350_v6 = vld [vmem:[#allocation5 + $0x58] sm:$0xff]  ;;  %v447_v7 = vld [vmem:[#allocation7 + $0x70] sm:$0xff]  ;;  %v446_v8 = vld [vmem:[#allocation7 + $0x68] sm:$0xff]  ;;  %s663_s29 = sshll.u32 %s337_s23, 4  ;;  %s650_s1 = scalar_lea.sflag [#allocation4], %s1333_s18  ;;  %s664_s29 = int_to_ptr.vmem [resolvable:$true] %s663_s29 }
  0x69   : > { %818 = vmatpush3.msra.mxu0 %v354_v1  ;;  %853 = vmatpush3.msra.mxu1 %v448_v5  ;;  %v349_v9 = vld [vmem:[#allocation5 + $0x50] sm:$0xff]  ;;  %v445_v10 = vld [vmem:[#allocation7 + $0x60] sm:$0xff]  ;;  %v348_v11 = vld [vmem:[#allocation5 + $0x48] sm:$0xff]  ;;  %p1464_p6 = scmp.ne.s32.totalorder %s1456_s21, 0  ;;  %s1166_s30 = smov [#allocation10]  }
  0x6a   : > { %819 = vmatprep.subr.mxu0 %v1164_v0  ;;  %854 = vmatprep.subr.mxu1 %v1164_v0  ;;  %v444_v12 = vld [vmem:[#allocation7 + $0x58] sm:$0xff]  ;;  %v347_v13 = vld [vmem:[#allocation5 + $0x40] sm:$0xff]  ;;  %v443_v14 = vld [vmem:[#allocation7 + $0x50] sm:$0xff]  ;;  %s1086_s28 = sshll.u32 %s1166_s30, 4  ;;  %s1087_s28 = int_to_ptr.vmem [resolvable:$false] %s1086_s28 }
  0x6b   : > { %820 = vmatpush3.msra.mxu0 %v353_v2  ;;  %855 = vmatpush3.msra.mxu1 %v447_v7  ;;  %v346_v15 = vld [vmem:[#allocation5 + $0x38] sm:$0xff]  ;;  %v442_v16 = vld [vmem:[#allocation7 + $0x48] sm:$0xff]  ;;  %v345_v17 = vld [vmem:[#allocation5 + $0x30] sm:$0xff]  ;;  %s1088_s19 = scalar_lea.vmem %s1087_s28, 256  ;;  %p1089_p5 = scmp.lt.s32.totalorder %s664_s29, %s1087_s28 }
  0x6c   : > { %821 = vmatprep.subr.mxu0 %v1164_v0  ;;  %856 = vmatprep.subr.mxu1 %v1164_v0  ;;  %v344_v18 = vld [vmem:[#allocation5 + $0x28] sm:$0xff]  ;;  %v343_v19 = vld [vmem:[#allocation5 + $0x20] sm:$0xff]  ;;  %v342_v20 = vld [vmem:[#allocation5 + $0x18] sm:$0xff] }
  0x6d   : > { %822 = vmatpush3.msra.mxu0 %v352_v3  ;;  %857 = vmatpush3.msra.mxu1 %v446_v8  ;;  %v341_v21 = vld [vmem:[#allocation5 + $0x10] sm:$0xff]  ;;  %v340_v22 = vld [vmem:[#allocation5 + $0x8] sm:$0xff]  ;;  %v339_v23 = vld [vmem:[#allocation5] sm:$0xff] }
  0x6e   : > { %823 = vmatprep.subr.mxu0 %v1164_v0  ;;  %858 = vmatprep.subr.mxu1 %v1164_v0  ;;  %v338_v24 = vld [vmem:[%s1339_s3] sm:$0xff]  ;;  %v441_v25 = vld [vmem:[#allocation7 + $0x40] sm:$0xff]  ;;  %v438_v28 = vld [vmem:[#allocation7 + $0x28] sm:$0xff]  ;;  %s1082_s3 = scalar_lea.vmem %s664_s29, 128 }
  0x6f   : > { %824 = vmatpush3.msra.mxu0 %v351_v4  ;;  %859 = vmatpush3.msra.mxu1 %v445_v10  ;;  %v440_v26 = vld [vmem:[#allocation7 + $0x38] sm:$0xff]  ;;  %v439_v27 = vld [vmem:[#allocation7 + $0x30] sm:$0xff]  ;;  %v437_v29 = vld [vmem:[#allocation7 + $0x20] sm:$0xff]  ;;  %p1083_p4 = scmp.ne.s32.totalorder %s664_s29, %s1082_s3  ;;  %p1090_p3 = scmp.lt.s32.totalorder %s1088_s19, %s1082_s3 }
  0x70   : > { %825 = vmatprep.subr.mxu0 %v1164_v0  ;;  %860 = vmatprep.subr.mxu1 %v1164_v0  ;;  %v436_v30 = vld [vmem:[#allocation7 + $0x18] sm:$0xff]  ;;  %v435_v31 = vld [vmem:[#allocation7 + $0x10] sm:$0xff]  ;;  %v434_v32 = vld [vmem:[#allocation7 + $0x8] sm:$0xff] }
  0x71   : > { %826 = vmatpush3.msra.mxu0 %v350_v6  ;;  %861 = vmatpush3.msra.mxu1 %v444_v12  ;;  %v433_v33 = vld [vmem:[#allocation7] sm:$0xff]  ;;  %v557_v34 = vld [vmem:[#allocation8 + $0xf8] sm:$0xff]  ;;  %v556_v35 = vld [vmem:[#allocation8 + $0xf0] sm:$0xff]  ;;  %p1084_p12 = pnand %p1083_p4, %p1464_p6  ;;  %p1091_p7 = por %p1090_p3, %p1089_p5 }
  0x72   : > { %827 = vmatprep.subr.mxu0 %v1164_v0  ;;  %862 = vmatprep.subr.mxu1 %v1164_v0  ;;  %v555_v36 = vld [vmem:[#allocation8 + $0xe8] sm:$0xff]  ;;  %v554_v37 = vld [vmem:[#allocation8 + $0xe0] sm:$0xff]  ;;  %v553_v38 = vld [vmem:[#allocation8 + $0xd8] sm:$0xff] }
  0x73   : > { %828 = vmatpush3.msra.mxu0 %v349_v9  ;;  %863 = vmatpush3.msra.mxu1 %v443_v14  ;;  %v552_v39 = vld [vmem:[#allocation8 + $0xd0] sm:$0xff]  ;;  %v551_v40 = vld [vmem:[#allocation8 + $0xc8] sm:$0xff]  ;;  %v550_v41 = vld [vmem:[#allocation8 + $0xc0] sm:$0xff]  ;;  %p1085_p0 = pneg %p1084_p12 }
  0x74   : > { %829 = vmatprep.subr.mxu0 %v1164_v0  ;;  %864 = vmatprep.subr.mxu1 %v1164_v0  ;;  %v549_v42 = vld [vmem:[#allocation8 + $0xb8] sm:$0xff]  ;;  %v548_v43 = vld [vmem:[#allocation8 + $0xb0] sm:$0xff]  ;;  %v547_v44 = vld [vmem:[#allocation8 + $0xa8] sm:$0xff] }
  0x75   : > { %830 = vmatpush3.msra.mxu0 %v348_v11  ;;  %865 = vmatpush3.msra.mxu1 %v442_v16  ;;  %v546_v45 = vld [vmem:[#allocation8 + $0xa0] sm:$0xff]  ;;  %v545_v46 = vld [vmem:[#allocation8 + $0x98] sm:$0xff]  ;;  %v544_v47 = vld [vmem:[#allocation8 + $0x90] sm:$0xff]  ;;  %v560_v11 = vlaneseq  ;;  %p1092_p9 = pnand %p1091_p7, %p1085_p0 }
  0x76   : > { %831 = vmatprep.subr.mxu0 %v1164_v0  ;;  %866 = vmatprep.subr.mxu1 %v1164_v0  ;;  %v543_v48 = vld [vmem:[#allocation8 + $0x88] sm:$0xff]  ;;  %v542_v49 = vld [vmem:[#allocation8 + $0x80] sm:$0xff]  ;;  %v541_v50 = vld [vmem:[#allocation8 + $0x78] sm:$0xff] }
  0x77   : > { %832 = vmatpush3.msra.mxu0 %v347_v13  ;;  %867 = vmatpush3.msra.mxu1 %v441_v25  ;;  %v540_v51 = vld [vmem:[#allocation8 + $0x70] sm:$0xff]  ;;  %v539_v52 = vld [vmem:[#allocation8 + $0x68] sm:$0xff]  ;;  %v538_v53 = vld [vmem:[#allocation8 + $0x60] sm:$0xff]  ;;  %v561_v12 = vshrl.u32 %v560_v11, 7 }
  0x78   : > { %833 = vmatprep.subr.mxu0 %v1164_v0  ;;  %868 = vmatprep.subr.mxu1 %v1164_v0  ;;  %v537_v54 = vld [vmem:[#allocation8 + $0x58] sm:$0xff]  ;;  %v536_v55 = vld [vmem:[#allocation8 + $0x50] sm:$0xff]  ;;  %v535_v56 = vld [vmem:[#allocation8 + $0x48] sm:$0xff] }
  0x79   : > { %834 = vmatpush3.msra.mxu0 %v346_v15  ;;  %869 = vmatpush3.msra.mxu1 %v440_v26  ;;  %v534_v57 = vld [vmem:[#allocation8 + $0x40] sm:$0xff]  ;;  %v533_v58 = vld [vmem:[#allocation8 + $0x38] sm:$0xff]  ;;  %v532_v59 = vld [vmem:[#allocation8 + $0x30] sm:$0xff]  ;;  %v566_v13 = vsub.s32 1, %v561_v12 }
  0x7a   : > { %835 = vmatprep.subr.mxu0 %v1164_v0  ;;  %870 = vmatprep.subr.mxu1 %v1164_v0  ;;  %v531_v60 = vld [vmem:[#allocation8 + $0x28] sm:$0xff]  ;;  %v530_v61 = vld [vmem:[#allocation8 + $0x20] sm:$0xff]  ;;  %v529_v62 = vld [vmem:[#allocation8 + $0x18] sm:$0xff] }
  0x7b   : > { %836 = vmatpush3.msra.mxu0 %v345_v17  ;;  %871 = vmatpush3.msra.mxu1 %v439_v27  ;;  %v776_v63 = vld [vmem:[%s1437_s2] ss:$0 sm:$0xff]  ;;  %v527_v5 = vld [vmem:[#allocation8 + $0x8] sm:$0xff]  ;;  %v526_v6 = vld [vmem:[#allocation8] sm:$0xff] }
  0x7c   : > { %837 = vmatprep.subr.mxu0 %v1164_v0  ;;  %872 = vmatprep.subr.mxu1 %v1164_v0  ;;  %v528_v4 = vld [vmem:[#allocation8 + $0x10] sm:$0xff] }
  0x7d   : > { %838 = vmatpush3.msra.mxu0 %v344_v18  ;;  %873 = vmatpush3.msra.mxu1 %v438_v28  ;;  %v777_v7 = vld [vmem:[%s1439_s4] ss:$0 sm:$0xff] }
  0x7e   : > { %839 = vmatprep.subr.mxu0 %v1164_v0  ;;  %874 = vmatprep.subr.mxu1 %v1164_v0  ;;  %v558_v14 = vld [vmem:[%s1441_s6] sm:$0x3] }
  0x7f   : > { %840 = vmatpush3.msra.mxu0 %v343_v19  ;;  %875 = vmatpush3.msra.mxu1 %v437_v29  ;;  %v567_v15 = vrot.slane %v558_v14, %v566_v13 }
  0x80   : > { %841 = vmatprep.subr.mxu0 %v1164_v0  ;;  %876 = vmatprep.subr.mxu1 %v1164_v0 }
  0x81   : > { %842 = vmatpush3.msra.mxu0 %v342_v20  ;;  %877 = vmatpush3.msra.mxu1 %v436_v30 }
  0x82   : > { %843 = vmatprep.subr.mxu0 %v1164_v0  ;;  %878 = vmatprep.subr.mxu1 %v1164_v0 }
  0x83   : > { %844 = vmatpush3.msra.mxu0 %v341_v21  ;;  %879 = vmatpush3.msra.mxu1 %v435_v31 }
  0x84   : > { %845 = vmatprep.subr.mxu0 %v1164_v0  ;;  %880 = vmatprep.subr.mxu1 %v1164_v0 }
  0x85   : > { %846 = vmatpush3.msra.mxu0 %v340_v22  ;;  %881 = vmatpush3.msra.mxu1 %v434_v32  ;;  %v562_v22 = vsub.s32 0, %v561_v12 }
  0x86   : > { %847 = vmatprep.subr.mxu0 %v1164_v0  ;;  %882 = vmatprep.subr.mxu1 %v1164_v0 }
  0x87   : > { %848 = vmatpush3.msra.mxu0 %v339_v23  ;;  %883 = vmatpush3.msra.mxu1 %v433_v33  ;;  %v563_v23 = vrot.slane %v558_v14, %v562_v22 }
  0x88   : > { %850 = vmatmul.mubr.f32.vlgmr.msra.gmra.mxu0 %v338_v24  ;;  %570 = vmatprep.subr.mxu0 %v557_v34 }
  0x89   : > { %634 = vmatprep.mubr.f32.mxu0 %v1164_v0  ;;  %571 = vmatpush1.msra.mxu0 %v556_v35 }
  0x8a   : > { %572 = vmatprep.subr.mxu0 %v555_v36 }
  0x8b   : > { %573 = vmatpush1.msra.mxu0 %v554_v37 }
  0x8c   : > { %574 = vmatprep.subr.mxu0 %v553_v38 }
  0x8d   : > { %575 = vmatpush1.msra.mxu0 %v552_v39 }
  0x8e   : > { %576 = vmatprep.subr.mxu0 %v551_v40 }
  0x8f   : > { %577 = vmatpush1.msra.mxu0 %v550_v41 }
  0x90   : > { %578 = vmatprep.subr.mxu0 %v549_v42 }
  0x91   : > { %579 = vmatpush1.msra.mxu0 %v548_v43 }
  0x92   : > { %580 = vmatprep.subr.mxu0 %v547_v44 }
  0x93   : > { %581 = vmatpush1.msra.mxu0 %v546_v45 }
  0x94   : > { %582 = vmatprep.subr.mxu0 %v545_v46 }
  0x95   : > { %583 = vmatpush1.msra.mxu0 %v544_v47 }
  0x96   : > { %584 = vmatprep.subr.mxu0 %v543_v48 }
  0x97   : > { %585 = vmatpush1.msra.mxu0 %v542_v49 }
  0x98   : > { %586 = vmatprep.subr.mxu0 %v541_v50 }
  0x99   : > { %587 = vmatpush1.msra.mxu0 %v540_v51 }
  0x9a   : > { %588 = vmatprep.subr.mxu0 %v539_v52 }
  0x9b   : > { %589 = vmatpush1.msra.mxu0 %v538_v53 }
  0x9c   : > { %590 = vmatprep.subr.mxu0 %v537_v54 }
  0x9d   : > { %591 = vmatpush1.msra.mxu0 %v536_v55 }
  0x9e   : > { %592 = vmatprep.subr.mxu0 %v535_v56 }
  0x9f   : > { %593 = vmatpush1.msra.mxu0 %v534_v57 }
  0xa0   : > { %594 = vmatprep.subr.mxu0 %v533_v58 }
  0xa1   : > { %595 = vmatpush1.msra.mxu0 %v532_v59 }
  0xa2   : > { %596 = vmatprep.subr.mxu0 %v531_v60 }
  0xa3   : > { %597 = vmatpush1.msra.mxu0 %v530_v61 }
  0xa4   : > { %598 = vmatprep.subr.mxu0 %v529_v62 }
  0xa5   : > { %599 = vmatpush1.msra.mxu0 %v528_v4 }
  0xa6   : > { %600 = vmatprep.subr.mxu0 %v527_v5 }
  0xa7   : > { %601 = vmatpush1.msra.mxu0 %v526_v6 }
 0x148   : > { %v428_v0 = vpop.f32.mrf.mxu0 }
 0x149   : > { %v429_v1 = vadd.f32 %v776_v63, %v428_v0 }
 0x14a   : > { %v851_v2 = vpop.f32.mrf.mxu0 }
 0x14b   : > { %970 = vtanh.f32 %v429_v1 }
 0x158   : > { %v971_v3 = vpop.eup %970 }
 0x159   : > { %885 = vmatmul.mubr.f32.vlgmr.msra.gmra.mxu1 %v971_v3 }
 0x219   : > { %v522_v8 = vpop.f32.mrf.mxu1 }
 0x21a   : > { %v523_v9 = vadd.f32 %v777_v7, %v522_v8 }
 0x21b   : > { %v886_v10 = vpop.f32.mrf.mxu1 }
 0x21c   : > { %635 = vmatmul.mubr.f32.vlgmr.msra.gmra.mxu0 %v523_v9 }
 0x2dc   : > { %v636_v16 = vpop.f32.mrf.mxu0 }
 0x2dd   : > { %v637_v24 = vadd.f32 %v636_v16, %v563_v23 }
 0x2de   : > { %v638_v17 = vpop.f32.mrf.mxu0 }
 0x2df   : > { %v639_v18 = vadd.f32 %v638_v17, %v567_v15 }
 0x2e1   : > { %v778_v19 = vmul.f32 -1.442695, %v639_v18 }
 0x2e3   : > { %972 = vpow2.f32 %v778_v19 }
 0x2f0   : > { %v973_v20 = vpop.eup %972 }
 0x2f1   : > { %v644_v21 = vadd.f32 1.0, %v973_v20 }
 0x2f3   : > { %974 = vrcp.f32 %v644_v21 }
 0x300   : > { %v975_v25 = vpop.eup %974 }
 0x301   : > { %v647_v26 = vmul.f32 %v975_v25, %v637_v24 }
 0x303   : > { %648 = vst [vmem:[%s337_s23] sm:$0xff] %v647_v26 }
 0x304   : > { %1095 = shalt.err (!%p1092_p9)
}
 0x305   : > { %s1096_s9 = scalar_lea.hbm %s661_s12, 128  ;;  %s1100_s13 = scalar_lea.hbm %s1442_s7, 256 }
 0x306   : > { %p1097_p13 = scmp.ne.s32.totalorder %s661_s12, %s1096_s9  ;;  %p1101_p11 = scmp.lt.s32.totalorder %s661_s12, %s1442_s7 }
 0x307   : > { %p1102_p1 = scmp.lt.s32.totalorder %s1100_s13, %s1096_s9 }
 0x308   : > { %p1098_p8 = pnand %p1097_p13, %p1464_p6 }
 0x309   : > { %p1103_p2 = por %p1102_p1, %p1101_p11 }
 0x30a   : > { %p1099_p10 = pneg %p1098_p8 }
 0x30c   : > { %p1104_p4 = pnand %p1103_p2, %p1099_p10 }
 0x30e   : > { %1107 = shalt.err (!%p1104_p4)
}
 0x30f   : > { %901 = dma.vmem_to_hbm [thread:$0]  (%p1464_p6), %s664_s29, 128, %s661_s12, %s650_s1  }
 0x310 PF: > { %s675_s22 = sand.u32 1, %s1142_s24   ;;  %p1465_p12 = scmp.ne.s32.totalorder %s1450_s8, 0 }
 0x311   : > { %p1466_p0 = scmp.ge.s32.totalorder %s1154_s27, 2  ;;  %s676_s23 = scalar_lea.sflag [#allocation4], %s675_s22 }
 0x313   : > { %p918_p5 = pnand %p1466_p0, %p1465_p12 }
 0x315   : > { %p919_p3 = pneg %p918_p5 }
 0x317   : > { %1137 = dma.done.wait (%p919_p3), %s676_s23, 128  }
 0x318   : > { %1139 = vsyncadd (%p919_p3), %s676_s23, 4294967168  ;;  %p22_p7 = scmp.ge.s32.totalorder %s1287_s17, 4   ;;  %s1467_s24 = smov %s1146_s25 }
 0x319   : > { %s1468_s25 = smov %s1150_s26  ;;  %s1469_s26 = smov %s1297_s20 }
 0x31a   : > { %s1470_s27 = smov %s1287_s17  ;;  %24 = sbr.rel (!%p22_p7) target bundleno = 10 (0xa), region = 105 }
 0x31f   :  { %681 = vsyncpa [#allocation3], 1 }
 0x320   :  { %683 = vsyncpa [#allocation3 + $0x1], 1 }
 0x321   :  { %684 = vsyncpa [#allocation6], 1 }
 0x322   :  { %685 = vsyncpa [#allocation9], 1 }
 0x323   :  { %686 = vsyncpa [#allocation4], 1 }
 0x324   :  { %688 = vsyncpa [#allocation4 + $0x1], 1 }

</bundles_post_ra>
